<compile_context>
chip_gen: v7x
topology: tpu7x:2x2x1
jax: 0.10.0
libtpu: 0.0.40
codegen_flags: <defaults>
</compile_context>

<pallas_src>
import functools

import numpy as np
import jax
import jax.numpy as jnp
from jax import lax
from jax.experimental import pallas as pl
from jax.experimental.pallas import tpu as pltpu


def _round_up(v, m):
  return (v + m - 1) // m * m


# ---------------------------------------------------------------------------
# Host-side constants: complex-packed, lane-dense DFT matrices (ortho norm).
# All matmul constants are bf16 (MXU operands); accumulation stays f32.
# ---------------------------------------------------------------------------
def _build_constants(bs, c_in, h, w):
  wf = w // 2 + 1
  wfp = _round_up(wf, 128)     # lane-dense frequency axis (pad lanes are zero)
  wp = _round_up(w, 128)       # lane-dense output columns

  # forward 1-D real DFT along w:  [a_r | a_i] = x @ csw,  csw = [Cw | Sw]
  # TODO(synk): for small w (2*wf <= 128) pack real/imag into one 128-lane
  # tile and recombine with pltpu.roll to halve the spectral lane footprint.
  m = np.arange(w, dtype=np.float64)[:, None]
  l = np.arange(wf, dtype=np.float64)[None, :]
  ang_w = 2.0 * np.pi * m * l / w
  csw = np.zeros((w, 2 * wfp), np.float64)
  csw[:, :wf] = np.cos(ang_w) / np.sqrt(w)
  csw[:, wfp:wfp + wf] = -np.sin(ang_w) / np.sqrt(w)

  # complex-packed 1-D DFT along h.  With A = [a_r | a_i] (lanes) and the
  # lane-swapped operand A_sw = [a_i | -a_r]:
  #     [X_r | X_i] = [Ch | Sh] @ [A ; A_sw]          (forward)
  # The same (h, 2h) matrix also performs the inverse (Ch, Sh symmetric):
  #     [B_r | B_i] = [Ch | Sh] @ [Y ; Y_sw],  Y_sw = [-Y_i | Y_r]
  n = np.arange(h, dtype=np.float64)[:, None]
  k = np.arange(h, dtype=np.float64)[None, :]
  ang_h = 2.0 * np.pi * n * k / h
  mf = np.concatenate([np.cos(ang_h), np.sin(ang_h)], axis=1) / np.sqrt(h)

  # Block-diagonal (kron) versions: one full-depth matmul per stage
  # (K = 2*g*h = 256 at the tested config) instead of g tiny K=h batched
  # matmuls with materialized broadcasts.
  # TODO(synk): for large bs*c*h switch to per-group packed matmuls under a
  # (b, c)-grid -- this constant is O((bs*c*h)^2) and only pays off while the
  # whole stage fits one or two MXU tiles.
  mhf = np.kron(np.eye(bs * c_in), mf)    # (g_in*h, 2*g_in*h)   forward
  mhi = np.kron(np.eye(bs), mf)           # (bs*h,   2*bs*h)     inverse/pair

  # inverse c2r along w, complex-packed:  out = [B_r | B_i] @ [cwi ; -swi]
  # Hermitian weights c_l in {1,2}; rows l >= wf and cols m >= w are zero.
  # K = 2*wfp = 256: exactly fills the v6e/v7x MXU contraction depth.
  li = np.arange(wf, dtype=np.float64)[:, None]
  mi = np.arange(w, dtype=np.float64)[None, :]
  ang_i = 2.0 * np.pi * li * mi / w
  cl = np.where((np.arange(wf) == 0)
                | ((w % 2 == 0) & (np.arange(wf) == w // 2)), 1.0, 2.0)[:, None]
  cswi = np.zeros((2 * wfp, wp), np.float64)
  cswi[:wf, :w] = cl * np.cos(ang_i) / np.sqrt(w)
  cswi[wfp:wfp + wf, :w] = -(cl * np.sin(ang_i) / np.sqrt(w))

  bf16 = jnp.bfloat16
  return (jnp.asarray(csw, bf16), jnp.asarray(mhf, bf16),
          jnp.asarray(mhi, bf16), jnp.asarray(cswi, bf16), wf, wfp, wp)


# ---------------------------------------------------------------------------
# Phase 1: forward rfft2 (w-DFT + complex-packed block h-DFT), single shot.
# ---------------------------------------------------------------------------
def _fwd_rfft2_kernel(x_ref, csw_ref, mhf_ref, xf_ref, *, bs, c_in, h, wfp):
  f32, bf16 = jnp.float32, jnp.bfloat16
  g = bs * c_in
  # 1-D real DFT along w: one lane-dense MXU matmul, lanes = [real | imag].
  aw = jnp.dot(x_ref[...].astype(bf16), csw_ref[...],
               preferred_element_type=f32)                   # (g*h, 2*wfp)
  a = aw.reshape(g, h, 2 * wfp)
  # complex-packed DFT along h: single block-diagonal matmul, K = 2*g*h.
  a_sw = jnp.concatenate([a[..., wfp:], -a[..., :wfp]], axis=-1)
  stk = jnp.concatenate([a, a_sw], axis=1).reshape(g * 2 * h, 2 * wfp)
  xf = jnp.dot(mhf_ref[...], stk.astype(bf16), preferred_element_type=f32)
  xf_ref[...] = xf.reshape(bs, c_in, h, 2 * wfp)


# ---------------------------------------------------------------------------
# Phase 2: 1x1 conv + fused BN/ReLU + inverse rfft2, gridded over channel
# pairs (grid axis = output complex channel; fully independent per step).
# ---------------------------------------------------------------------------
def _conv_bn_irfft2_kernel(xf_ref, w_ref, gamma_ref, beta_ref, mhi_ref,
                           cswi_ref, out_ref, *, bs, c_in, c_out, h, wf, wfp,
                           wp, eps):
  f32, bf16 = jnp.float32, jnp.bfloat16
  pair = pl.program_id(0)                 # which output complex-channel pair
  xf = xf_ref[...]                        # (bs, c_in, h, 2*wfp) f32
  x_r = xf[..., :wfp]
  x_i = xf[..., wfp:]
  inv_cnt = 1.0 / float(bs * h * wf)      # true element count (no lane pad)

  # 1x1 conv (VPU broadcast-accumulate, scalar weights from SMEM) with the
  # BatchNorm normalize + ReLU fused into the same pass: the whole
  # (bs, h, wfp) channel is live in `acc`, so stats + normalize happen before
  # the value is ever written anywhere.
  # TODO(synk): for large channel counts restructure as a channels-last MXU
  # GEMM ((bs*h*wfp, 2*c_in) @ (2*c_in, 2)) instead of the scalar loop.
  def conv_bn_relu(ch):
    acc = w_ref[ch, 0] * x_r[:, 0] + w_ref[ch, c_in] * x_i[:, 0]
    for c in range(1, c_in):
      acc = acc + w_ref[ch, c] * x_r[:, c] + w_ref[ch, c_in + c] * x_i[:, c]
    mean = jnp.sum(acc) * inv_cnt
    var = jnp.maximum(jnp.sum(acc * acc) * inv_cnt - mean * mean, 0.0)
    scale = gamma_ref[ch] * lax.rsqrt(var + eps)
    shift = beta_ref[ch] - mean * scale
    return jnp.maximum(acc * scale + shift, 0.0)         # (bs, h, wfp)

  y_r = conv_bn_relu(pair)                # real output channel
  y_i = conv_bn_relu(pair + c_out)        # imag output channel

  # complex-packed inverse DFT along h (block-diagonal over the batch).
  y = jnp.concatenate([y_r, y_i], axis=-1)               # (bs, h, 2*wfp)
  y_sw = jnp.concatenate([-y_i, y_r], axis=-1)
  stk = jnp.concatenate([y, y_sw], axis=1).reshape(bs * 2 * h, 2 * wfp)
  brbi = jnp.dot(mhi_ref[...], stk.astype(bf16),
                 preferred_element_type=f32)              # (bs*h, 2*wfp)
  # complex-packed c2r along w: K = 2*wfp, lane-dense unmasked (8,128) store.
  out = jnp.dot(brbi.astype(bf16), cswi_ref[...],
                preferred_element_type=f32)               # (bs*h, wp)
  out_ref[...] = out.reshape(bs, 1, h, wp)


# ---------------------------------------------------------------------------
# Wrapper.
# ---------------------------------------------------------------------------
def fourier_conv(x, conv_weight, bn_gamma, bn_beta, eps=1e-5):
  """x: (bs, c_in, h, w) f32 NCHW; conv_weight: (2*c_out, 2*c_in) f32."""
  bs, c_in, h, w = x.shape
  c_out = conv_weight.shape[0] // 2
  csw, mhf, mhi, cswi, wf, wfp, wp = _build_constants(bs, c_in, h, w)

  x2 = x.reshape(bs * c_in * h, w).astype(jnp.float32)
  vmem = pl.BlockSpec(memory_space=pltpu.MemorySpace.VMEM)
  smem = pl.BlockSpec(memory_space=pltpu.MemorySpace.SMEM)
  # VMEM budget: everything here is < 2 MiB; 32 MiB keeps headroom on v7x
  # (64 MiB physical per core) as well as on v5e/v6e (128 MiB).
  vmem_budget = dict(vmem_limit_bytes=32 * 1024 * 1024)

  # Phase 1: forward rfft2 -> HBM spectral tensor (b, c, k, [re|im]).
  xf = pl.pallas_call(
      functools.partial(_fwd_rfft2_kernel, bs=bs, c_in=c_in, h=h, wfp=wfp),
      out_shape=jax.ShapeDtypeStruct((bs, c_in, h, 2 * wfp), jnp.float32),
      in_specs=[vmem, vmem, vmem],
      out_specs=vmem,
      compiler_params=pltpu.CompilerParams(**vmem_budget),
  )(x2, csw, mhf)

  # Phase 2: conv + BN + ReLU + inverse rfft2, gridded over channel pairs.
  # Each step is self-contained (its own BN stats), so the axis is "parallel"
  # (engages v7x's second TensorCore) and output writeback overlaps compute.
  out_p = pl.pallas_call(
      functools.partial(_conv_bn_irfft2_kernel, bs=bs, c_in=c_in, c_out=c_out,
                        h=h, wf=wf, wfp=wfp, wp=wp, eps=float(eps)),
      out_shape=jax.ShapeDtypeStruct((bs, c_out, h, wp), jnp.float32),
      grid=(c_out,),
      in_specs=[vmem, smem, smem, smem, vmem, vmem],
      out_specs=pl.BlockSpec((bs, 1, h, wp), lambda i: (0, i, 0, 0)),
      compiler_params=pltpu.CompilerParams(
          dimension_semantics=("parallel",), **vmem_budget),
  )(xf, conv_weight.astype(jnp.float32), bn_gamma.astype(jnp.float32),
    bn_beta.astype(jnp.float32), mhi, cswi)

  # rows already ordered (b, o, n, m): only drop the zero lane padding.
  return out_p[..., :w]


# ---------------------------------------------------------------------------
# Pure-JAX reference (jnp.fft) for validation.
# ---------------------------------------------------------------------------
def _reference(x, conv_weight, bn_gamma, bn_beta, eps=1e-5):
  bs, c, h, w = x.shape
  ff = jnp.fft.rfftn(x, s=(h, w), axes=(-2, -1), norm="ortho")
  ff = jnp.concatenate([ff.real, ff.imag], axis=1)
  y = jnp.einsum("oc,bchw->bohw", conv_weight, ff)
  mu = y.mean(axis=(0, 2, 3), keepdims=True)
  var = ((y - mu) ** 2).mean(axis=(0, 2, 3), keepdims=True)
  y = (bn_gamma.reshape(1, -1, 1, 1) * (y - mu) / jnp.sqrt(var + eps)
       + bn_beta.reshape(1, -1, 1, 1))
  y = jnp.maximum(y, 0.0)
  half = y.shape[1] // 2
  yc = y[:, :half] + 1j * y[:, half:]
  return jnp.fft.irfftn(yc, s=(h, w), axes=(2, 3), norm="ortho")


if __name__ == "__main__":
  bs, c_in, c_out, h, w = 2, 4, 4, 16, 16
  key = jax.random.PRNGKey(0)
  k1, k2, k3, k4 = jax.random.split(key, 4)

  x = jax.random.normal(k1, (bs, c_in, h, w), dtype=jnp.float32)
  # Conv2d(2*c_in, 2*c_out, 1, bias=False) weight squeezed to (2*c_out, 2*c_in).
  conv_weight = 0.1 * jax.random.normal(k2, (2 * c_out, 2 * c_in), jnp.float32)
  # Non-trivial BatchNorm affine params (training-mode batch statistics).
  bn_gamma = 1.0 + 0.1 * jax.random.normal(k3, (2 * c_out,), jnp.float32)
  bn_beta = 0.1 * jax.random.normal(k4, (2 * c_out,), jnp.float32)

  out = jax.block_until_ready(fourier_conv(x, conv_weight, bn_gamma, bn_beta))
  ref = jax.block_until_ready(_reference(x, conv_weight, bn_gamma, bn_beta))

  assert out.shape == (bs, c_out, h, w) and out.dtype == jnp.float32
  # bf16 MXU operands (per perf review) across four chained DFT/conv stages:
  # slightly looser tolerance than the all-f32 variant (validated at 1e-2);
  # accumulation, conv, and BN statistics all remain f32.
  np.testing.assert_allclose(np.asarray(out), np.asarray(ref),
                             rtol=3e-2, atol=3e-2)
  print("KERNEL_OK")
</pallas_src>

<mosaic_0001>
module attributes {stable_mosaic.version = 11 : i64} {
  func.func @_fwd_rfft2_kernel(%arg0: memref<128x16xf32, #tpu.memory_space<vmem>>, %arg1: memref<16x256xbf16, #tpu.memory_space<vmem>>, %arg2: memref<128x256xbf16, #tpu.memory_space<vmem>>, %arg3: memref<2x4x16x256xf32, #tpu.memory_space<vmem>>) attributes {dimension_semantics = [], scalar_prefetch = 0 : i64, scratch_operands = 0 : i64, tpu.core_type = #tpu.core_type<tc>} {
    %c0 = arith.constant 0 : index
    %c0_0 = arith.constant 0 : index
    %0 = vector.load %arg0[%c0, %c0_0] : memref<128x16xf32, #tpu.memory_space<vmem>>, vector<128x16xf32>
    %1 = arith.truncf %0 : vector<128x16xf32> to vector<128x16xbf16>
    %c0_1 = arith.constant 0 : index
    %c0_2 = arith.constant 0 : index
    %2 = vector.load %arg1[%c0_1, %c0_2] : memref<16x256xbf16, #tpu.memory_space<vmem>>, vector<16x256xbf16>
    %cst = arith.constant dense<0.000000e+00> : vector<128x256xf32>
    %3 = tpu.matmul %1, %2, %cst {dimension_numbers = #tpu.dot_dimension_numbers<[1], [0], [0], [1], [0, 0, 1, 1], [], []>} : vector<128x16xbf16>, vector<16x256xbf16>, vector<128x256xf32> -> vector<128x256xf32>
    %4 = vector.shape_cast %3 : vector<128x256xf32> to vector<8x16x256xf32>
    %5 = vector.extract_strided_slice %4 {offsets = [0, 0, 128], sizes = [8, 16, 128], strides = [1, 1, 1]} : vector<8x16x256xf32> to vector<8x16x128xf32>
    %6 = vector.extract_strided_slice %4 {offsets = [0, 0, 0], sizes = [8, 16, 128], strides = [1, 1, 1]} : vector<8x16x256xf32> to vector<8x16x128xf32>
    %cst_3 = arith.constant 0.000000e+00 : f32
    %7 = vector.broadcast %cst_3 : f32 to vector<8x16x128xf32>
    %8 = arith.subf %7, %6 : vector<8x16x128xf32>
    %9 = tpu.concatenate %5, %8 in 2 : vector<8x16x128xf32>, vector<8x16x128xf32> -> vector<8x16x256xf32>
    %10 = tpu.concatenate %4, %9 in 1 : vector<8x16x256xf32>, vector<8x16x256xf32> -> vector<8x32x256xf32>
    %11 = vector.shape_cast %10 : vector<8x32x256xf32> to vector<256x256xf32>
    %c0_4 = arith.constant 0 : index
    %c0_5 = arith.constant 0 : index
    %12 = vector.load %arg2[%c0_4, %c0_5] : memref<128x256xbf16, #tpu.memory_space<vmem>>, vector<128x256xbf16>
    %13 = arith.truncf %11 : vector<256x256xf32> to vector<256x256xbf16>
    %cst_6 = arith.constant dense<0.000000e+00> : vector<128x256xf32>
    %14 = tpu.matmul %12, %13, %cst_6 {dimension_numbers = #tpu.dot_dimension_numbers<[1], [0], [0], [1], [0, 0, 1, 1], [], []>} : vector<128x256xbf16>, vector<256x256xbf16>, vector<128x256xf32> -> vector<128x256xf32>
    %15 = vector.shape_cast %14 : vector<128x256xf32> to vector<2x4x16x256xf32>
    %c0_7 = arith.constant 0 : index
    %c0_8 = arith.constant 0 : index
    %c0_9 = arith.constant 0 : index
    %c0_10 = arith.constant 0 : index
    %16 = vector.load %arg3[%c0_7, %c0_8, %c0_9, %c0_10] : memref<2x4x16x256xf32, #tpu.memory_space<vmem>>, vector<2x4x16x256xf32>
    tpu.vector_store %arg3[%c0_7, %c0_8, %c0_9, %c0_10], %15 {strides = array<i32>} : memref<2x4x16x256xf32, #tpu.memory_space<vmem>>, vector<2x4x16x256xf32>,
    return
  }
}

</mosaic_0001>

<bundles_post_ra>
// kernel: tpu_custom_call.1
= control target key start
LH: loop header
LB: loop body
LE: loop exit
PB: predicated region body
PF: predicated region fallthrough
CT: control target
= control target key end

     0   :  { %v600_v2 = vmov 0   ;;  %vm52_vm0 = vcmask 130048   ;;  %s746_s0 = inlined_call_operand.vmem [shape: f32[128,16], index: 0, kind: input, shape index: {}]   ;;  %s747_s1 = inlined_call_operand.vmem [shape: bf16[16,256], index: 1, kind: input, shape index: {}]   ;;  %s748_s2 = inlined_call_operand.vmem [shape: bf16[128,256], index: 2, kind: input, shape index: {}]   ;;  %s749_s3 = inlined_call_operand.hbm [shape: f32[2,4,16,256], index: 3, kind: output, shape index: {}]  }
   0x1   :  { %v549_v0 = vld [vmem:[%s747_s1 + $0x4] ss:$8 sps:$4 sm:$0xff]   ;;  %v551_v1 = vld [vmem:[%s747_s1] ss:$8 sps:$4 sm:$0xff]   ;;  %109 = vmatprep.mubr.bf16.mxu0 %v600_v2  ;;  %v18_v6 = vld [vmem:[%s746_s0 + $0x10] sm:$0xff] }
   0x2   :  { %v16_v3 = vld [vmem:[%s746_s0] sm:$0xff]  ;;  %v17_v4 = vld [vmem:[%s746_s0 + $0x8] sm:$0xff]  ;;  %77 = vmatprep.subr.bf16.mxu0 %v549_v0  ;;  %v19_v7 = vld [vmem:[%s746_s0 + $0x18] sm:$0xff] }
   0x3   :  { %v32_v5 = vpack.c.bf16 %v17_v4, %v16_v3  ;;  %78 = vmatpush1.bf16.msra.mxu0 %v551_v1  ;;  %v33_v8 = vpack.c.bf16 %v19_v7, %v18_v6 }
   0x6   :  { %489 = vmatmul.mubr.msk.bf16.vlgmr.msra.gmra.mrb[0].mxu0 %vm52_vm0, %v32_v5 }
   0x7   :  { %119 = vmatprep.mubr.bf16.mxu0 %v600_v2 }
   0x8   :  { %8 = vsyncpa [#allocation3], 0  ;;  %v20_v9 = vld [vmem:[%s746_s0 + $0x20] sm:$0xff]  ;;  %v21_v10 = vld [vmem:[%s746_s0 + $0x28] sm:$0xff] }
   0x9   :  { %v34_v11 = vpack.c.bf16 %v21_v10, %v20_v9  ;;  %v22_v12 = vld [vmem:[%s746_s0 + $0x30] sm:$0xff]  ;;  %v23_v13 = vld [vmem:[%s746_s0 + $0x38] sm:$0xff]  ;;  %v24_v15 = vld [vmem:[%s746_s0 + $0x40] sm:$0xff] }
   0xa   :  { %v35_v14 = vpack.c.bf16 %v23_v13, %v22_v12  ;;  %v25_v16 = vld [vmem:[%s746_s0 + $0x48] sm:$0xff]  ;;  %v26_v18 = vld [vmem:[%s746_s0 + $0x50] sm:$0xff]  ;;  %v27_v19 = vld [vmem:[%s746_s0 + $0x58] sm:$0xff] }
   0xb   :  { %v36_v17 = vpack.c.bf16 %v25_v16, %v24_v15  ;;  %v37_v20 = vpack.c.bf16 %v27_v19, %v26_v18  ;;  %v28_v21 = vld [vmem:[%s746_s0 + $0x60] sm:$0xff]  ;;  %v29_v22 = vld [vmem:[%s746_s0 + $0x68] sm:$0xff]  ;;  %v30_v24 = vld [vmem:[%s746_s0 + $0x70] sm:$0xff] }
   0xc   :  { %v38_v23 = vpack.c.bf16 %v29_v22, %v28_v21  ;;  %v31_v25 = vld [vmem:[%s746_s0 + $0x78] sm:$0xff]  ;;  %v560_v28 = vld [vmem:[%s748_s2 + $0x4] ss:$8 sps:$4 sm:$0xff]  }
   0xd   :  { %v39_v26 = vpack.c.bf16 %v31_v25, %v30_v24  ;;  %v554_v27 = vld [vmem:[%s748_s2 + $0x34] ss:$8 sps:$4 sm:$0xff]  }
   0xe   :  { %490 = vmatmul.mubr.msk.bf16.gmra.mrb[4].mxu0 %vm52_vm0, %v33_v8  ;;  %388 = vmatprep.mubr.bf16.mxu1 %v554_v27 }
   0xf   :  { %129 = vmatprep.mubr.bf16.mxu0 %v600_v2 }
  0x16   :  { %491 = vmatmul.mubr.msk.bf16.gmra.mrb[8].mxu0 %vm52_vm0, %v34_v11 }
  0x17   :  { %139 = vmatprep.mubr.bf16.mxu0 %v600_v2 }
  0x1e   :  { %492 = vmatmul.mubr.msk.bf16.gmra.mrb[12].mxu0 %vm52_vm0, %v35_v14 }
  0x1f   :  { %149 = vmatprep.mubr.bf16.mxu0 %v600_v2 }
  0x26   :  { %493 = vmatmul.mubr.msk.bf16.gmra.mrb[16].mxu0 %vm52_vm0, %v36_v17 }
  0x27   :  { %159 = vmatprep.mubr.bf16.mxu0 %v600_v2 }
  0x2e   :  { %494 = vmatmul.mubr.msk.bf16.gmra.mrb[20].mxu0 %vm52_vm0, %v37_v20 }
  0x2f   :  { %169 = vmatprep.mubr.bf16.mxu0 %v600_v2 }
  0x36   :  { %495 = vmatmul.mubr.msk.bf16.gmra.mrb[24].mxu0 %vm52_vm0, %v38_v23 }
  0x37   :  { %179 = vmatprep.mubr.bf16.mxu0 %v600_v2 }
  0x3e   :  { %496 = vmatmul.mubr.msk.bf16.gmra.mrb[28].mxu0 %vm52_vm0, %v39_v26 }
  0x3f   :  { %358 = vmatprep.mubr.bf16.mxu0 %v560_v28 }
  0xd9   :  { %v111_v29 = vpop.f32.mrb[0].mxu0 }
  0xda   :  { %v113_v30 = vpop.f32.mrb[1].mxu0  ;;  %v190_v32 = vsub.f32 0.0, %v111_v29 }
  0xdb   :  { %v115_v31 = vpop.f32.mrb[2].mxu0 }
  0xdc   :  { %v191_v33 = vsub.f32 0.0, %v115_v31  ;;  %v222_v34 = vpack.c.bf16 %v115_v31, %v111_v29  ;;  %v117_v35 = vpop.f32.mrb[3].mxu0 }
  0xdd   :  { %v223_v36 = vpack.c.bf16 %v117_v35, %v113_v30 }
  0xde   :  { %v224_v37 = vpack.c.bf16 %v191_v33, %v190_v32 }
  0xdf   :  { %326 = vmatprep.subr.bf16.mxu0 %v223_v36  ;;  %513 = vmatprep.subr.bf16.mxu1 %v223_v36 }
  0xe0   :  { %327 = vmatpush1.bf16.msra.mxu0 %v222_v34  ;;  %529 = vmatpush1.bf16.msra.mxu1 %v222_v34 }
  0xe1   :  { %v121_v38 = vpop.f32.mrb[4].mxu0  ;;  %328 = vmatprep.subr.bf16.mxu0 %v224_v37  ;;  %514 = vmatprep.subr.bf16.mxu1 %v224_v37  ;;  %v552_v37 = vld [vmem:[%s748_s2 + $0x30] ss:$8 sps:$4 sm:$0xff]  }
  0xe2   :  { %v123_v39 = vpop.f32.mrb[5].mxu0  ;;  %v192_v41 = vsub.f32 0.0, %v121_v38 }
  0xe3   :  { %v125_v40 = vpop.f32.mrb[6].mxu0 }
  0xe4   :  { %v193_v42 = vsub.f32 0.0, %v125_v40  ;;  %v225_v43 = vpack.c.bf16 %v125_v40, %v121_v38  ;;  %v127_v44 = vpop.f32.mrb[7].mxu0  ;;  %329 = vmatpush1.bf16.msra.mxu0 %v223_v36  ;;  %530 = vmatpush1.bf16.msra.mxu1 %v223_v36  ;;  %v558_v38 = vld [vmem:[%s748_s2] ss:$8 sps:$4 sm:$0xff]   ;;  %v564_v40 = vld [vmem:[%s748_s2 + $0x14] ss:$8 sps:$4 sm:$0xff]  }
  0xe5   :  { %v226_v45 = vpack.c.bf16 %v127_v44, %v123_v39  ;;  %v555_v39 = vld [vmem:[%s748_s2 + $0x44] ss:$8 sps:$4 sm:$0xff]  }
  0xe6   :  { %v227_v46 = vpack.c.bf16 %v193_v42, %v192_v41  ;;  %v557_v41 = vld [vmem:[%s748_s2 + $0x40] ss:$8 sps:$4 sm:$0xff]   ;;  %v566_v42 = vld [vmem:[%s748_s2 + $0x10] ss:$8 sps:$4 sm:$0xff]   ;;  %v570_v44 = vld [vmem:[%s748_s2 + $0x24] ss:$8 sps:$4 sm:$0xff]  }
  0xe7   :  { %330 = vmatprep.subr.bf16.mxu0 %v226_v45  ;;  %515 = vmatprep.subr.bf16.mxu1 %v226_v45 }
  0xe8   :  { %331 = vmatpush1.bf16.msra.mxu0 %v225_v43  ;;  %531 = vmatpush1.bf16.msra.mxu1 %v225_v43  ;;  %v561_v43 = vld [vmem:[%s748_s2 + $0x54] ss:$8 sps:$4 sm:$0xff]  }
  0xe9   :  { %v131_v47 = vpop.f32.mrb[8].mxu0  ;;  %332 = vmatprep.subr.bf16.mxu0 %v227_v46  ;;  %516 = vmatprep.subr.bf16.mxu1 %v227_v46  ;;  %v572_v46 = vld [vmem:[%s748_s2 + $0x20] ss:$8 sps:$4 sm:$0xff]  }
  0xea   :  { %v133_v48 = vpop.f32.mrb[9].mxu0  ;;  %v194_v50 = vsub.f32 0.0, %v131_v47 }
  0xeb   :  { %v135_v49 = vpop.f32.mrb[10].mxu0 }
  0xec   :  { %v195_v51 = vsub.f32 0.0, %v135_v49  ;;  %v228_v52 = vpack.c.bf16 %v135_v49, %v131_v47  ;;  %v137_v53 = vpop.f32.mrb[11].mxu0  ;;  %333 = vmatpush1.bf16.msra.mxu0 %v226_v45  ;;  %532 = vmatpush1.bf16.msra.mxu1 %v226_v45  ;;  %v563_v45 = vld [vmem:[%s748_s2 + $0x50] ss:$8 sps:$4 sm:$0xff]   ;;  %v567_v47 = vld [vmem:[%s748_s2 + $0x64] ss:$8 sps:$4 sm:$0xff]  }
  0xed   :  { %v229_v54 = vpack.c.bf16 %v137_v53, %v133_v48  ;;  %v569_v48 = vld [vmem:[%s748_s2 + $0x60] ss:$8 sps:$4 sm:$0xff]   ;;  %v573_v49 = vld [vmem:[%s748_s2 + $0x74] ss:$8 sps:$4 sm:$0xff]  }
  0xee   :  { %v230_v55 = vpack.c.bf16 %v195_v51, %v194_v50  ;;  %v575_v50 = vld [vmem:[%s748_s2 + $0x70] ss:$8 sps:$4 sm:$0xff]   ;;  %s601_s2 = smov [#allocation2]  }
  0xef   :  { %334 = vmatprep.subr.bf16.mxu0 %v229_v54  ;;  %517 = vmatprep.subr.bf16.mxu1 %v229_v54  ;;  %s476_s22 = sshll.u32 %s601_s2, 4  ;;  %s477_s22 = int_to_ptr.vmem [resolvable:$true] %s476_s22 }
  0xf0   :  { %335 = vmatpush1.bf16.msra.mxu0 %v228_v52  ;;  %533 = vmatpush1.bf16.msra.mxu1 %v228_v52  ;;  %s576_s0 = scalar_lea.vmem %s477_s22, 4096  ;;  %p581_p1 = scmp.lt.s32.totalorder %s477_s22, %s477_s22 }
  0xf1   :  { %v141_v56 = vpop.f32.mrb[12].mxu0  ;;  %336 = vmatprep.subr.bf16.mxu0 %v230_v55  ;;  %518 = vmatprep.subr.bf16.mxu1 %v230_v55  ;;  %p577_p0 = scmp.ne.s32.totalorder %s477_s22, %s576_s0  ;;  %p582_p2 = scmp.lt.s32.totalorder %s576_s0, %s576_s0 }
  0xf2   :  { %v143_v57 = vpop.f32.mrb[13].mxu0  ;;  %v196_v59 = vsub.f32 0.0, %v141_v56 }
  0xf3   :  { %v145_v58 = vpop.f32.mrb[14].mxu0  ;;  %p583_p3 = por %p582_p2, %p581_p1 }
  0xf4   :  { %v197_v60 = vsub.f32 0.0, %v145_v58  ;;  %v231_v61 = vpack.c.bf16 %v145_v58, %v141_v56  ;;  %v147_v62 = vpop.f32.mrb[15].mxu0  ;;  %337 = vmatpush1.bf16.msra.mxu0 %v229_v54  ;;  %534 = vmatpush1.bf16.msra.mxu1 %v229_v54 }
  0xf5   :  { %v232_v63 = vpack.c.bf16 %v147_v62, %v143_v57  ;;  %p584_p4 = pnand %p583_p3, %p577_p0 }
  0xf6   :  { %v233_v0 = vpack.c.bf16 %v197_v60, %v196_v59 }
  0xf7   :  { %338 = vmatprep.subr.bf16.mxu0 %v232_v63  ;;  %519 = vmatprep.subr.bf16.mxu1 %v232_v63 }
  0xf8   :  { %339 = vmatpush1.bf16.msra.mxu0 %v231_v61  ;;  %535 = vmatpush1.bf16.msra.mxu1 %v231_v61 }
  0xf9   :  { %v151_v1 = vpop.f32.mrb[16].mxu0  ;;  %340 = vmatprep.subr.bf16.mxu0 %v233_v0  ;;  %520 = vmatprep.subr.bf16.mxu1 %v233_v0 }
  0xfa   :  { %v153_v2 = vpop.f32.mrb[17].mxu0  ;;  %v198_v4 = vsub.f32 0.0, %v151_v1 }
  0xfb   :  { %v155_v3 = vpop.f32.mrb[18].mxu0 }
  0xfc   :  { %v199_v5 = vsub.f32 0.0, %v155_v3  ;;  %v234_v6 = vpack.c.bf16 %v155_v3, %v151_v1  ;;  %v157_v7 = vpop.f32.mrb[19].mxu0  ;;  %341 = vmatpush1.bf16.msra.mxu0 %v232_v63  ;;  %536 = vmatpush1.bf16.msra.mxu1 %v232_v63 }
  0xfd   :  { %v235_v8 = vpack.c.bf16 %v157_v7, %v153_v2 }
  0xfe   :  { %v236_v9 = vpack.c.bf16 %v199_v5, %v198_v4 }
  0xff   :  { %342 = vmatprep.subr.bf16.mxu0 %v235_v8  ;;  %521 = vmatprep.subr.bf16.mxu1 %v235_v8 }
 0x100   :  { %343 = vmatpush1.bf16.msra.mxu0 %v234_v6  ;;  %537 = vmatpush1.bf16.msra.mxu1 %v234_v6 }
 0x101   :  { %v161_v10 = vpop.f32.mrb[20].mxu0  ;;  %344 = vmatprep.subr.bf16.mxu0 %v236_v9  ;;  %522 = vmatprep.subr.bf16.mxu1 %v236_v9 }
 0x102   :  { %v163_v11 = vpop.f32.mrb[21].mxu0  ;;  %v200_v13 = vsub.f32 0.0, %v161_v10 }
 0x103   :  { %v165_v12 = vpop.f32.mrb[22].mxu0 }
 0x104   :  { %v201_v14 = vsub.f32 0.0, %v165_v12  ;;  %v237_v15 = vpack.c.bf16 %v165_v12, %v161_v10  ;;  %v167_v16 = vpop.f32.mrb[23].mxu0  ;;  %345 = vmatpush1.bf16.msra.mxu0 %v235_v8  ;;  %538 = vmatpush1.bf16.msra.mxu1 %v235_v8 }
 0x105   :  { %v238_v17 = vpack.c.bf16 %v167_v16, %v163_v11 }
 0x106   :  { %v239_v18 = vpack.c.bf16 %v201_v14, %v200_v13 }
 0x107   :  { %346 = vmatprep.subr.bf16.mxu0 %v238_v17  ;;  %523 = vmatprep.subr.bf16.mxu1 %v238_v17 }
 0x108   :  { %347 = vmatpush1.bf16.msra.mxu0 %v237_v15  ;;  %539 = vmatpush1.bf16.msra.mxu1 %v237_v15 }
 0x109   :  { %v171_v19 = vpop.f32.mrb[24].mxu0  ;;  %348 = vmatprep.subr.bf16.mxu0 %v239_v18  ;;  %524 = vmatprep.subr.bf16.mxu1 %v239_v18 }
 0x10a   :  { %v173_v20 = vpop.f32.mrb[25].mxu0  ;;  %v202_v22 = vsub.f32 0.0, %v171_v19 }
 0x10b   :  { %v175_v21 = vpop.f32.mrb[26].mxu0 }
 0x10c   :  { %v203_v23 = vsub.f32 0.0, %v175_v21  ;;  %v240_v24 = vpack.c.bf16 %v175_v21, %v171_v19  ;;  %v177_v25 = vpop.f32.mrb[27].mxu0  ;;  %349 = vmatpush1.bf16.msra.mxu0 %v238_v17  ;;  %540 = vmatpush1.bf16.msra.mxu1 %v238_v17 }
 0x10d   :  { %v241_v26 = vpack.c.bf16 %v177_v25, %v173_v20 }
 0x10e   :  { %v242_v27 = vpack.c.bf16 %v203_v23, %v202_v22 }
 0x10f   :  { %350 = vmatprep.subr.bf16.mxu0 %v241_v26  ;;  %525 = vmatprep.subr.bf16.mxu1 %v241_v26 }
 0x110   :  { %351 = vmatpush1.bf16.msra.mxu0 %v240_v24  ;;  %541 = vmatpush1.bf16.msra.mxu1 %v240_v24 }
 0x111   :  { %v181_v28 = vpop.f32.mrb[28].mxu0  ;;  %352 = vmatprep.subr.bf16.mxu0 %v242_v27  ;;  %526 = vmatprep.subr.bf16.mxu1 %v242_v27 }
 0x112   :  { %v183_v29 = vpop.f32.mrb[29].mxu0  ;;  %v204_v31 = vsub.f32 0.0, %v181_v28 }
 0x113   :  { %v185_v30 = vpop.f32.mrb[30].mxu0 }
 0x114   :  { %v205_v32 = vsub.f32 0.0, %v185_v30  ;;  %v243_v33 = vpack.c.bf16 %v185_v30, %v181_v28  ;;  %v187_v34 = vpop.f32.mrb[31].mxu0  ;;  %353 = vmatpush1.bf16.msra.mxu0 %v241_v26  ;;  %542 = vmatpush1.bf16.msra.mxu1 %v241_v26 }
 0x115   :  { %v244_v35 = vpack.c.bf16 %v187_v34, %v183_v29 }
 0x116   :  { %v245_v36 = vpack.c.bf16 %v205_v32, %v204_v31 }
 0x117   :  { %354 = vmatprep.subr.bf16.mxu0 %v244_v35  ;;  %527 = vmatprep.subr.bf16.mxu1 %v244_v35 }
 0x118   :  { %355 = vmatpush1.bf16.msra.mxu0 %v243_v33  ;;  %543 = vmatpush1.bf16.msra.mxu1 %v243_v33 }
 0x119   :  { %356 = vmatprep.subr.bf16.mxu0 %v245_v36  ;;  %528 = vmatprep.subr.bf16.mxu1 %v245_v36 }
 0x11c   :  { %357 = vmatpush1.bf16.msra.mxu0 %v244_v35  ;;  %544 = vmatpush1.bf16.msra.mxu1 %v244_v35 }
 0x11f   :  { %389 = vmatmul.mubr.bf16.vlgmr.msra.gmra.mrb[0].mxu1 %v552_v37  ;;  %359 = vmatmul.mubr.bf16.vlgmr.msra.gmra.mrb[32].mxu0 %v558_v38 }
 0x120   :  { %398 = vmatprep.mubr.bf16.mxu1 %v555_v39  ;;  %368 = vmatprep.mubr.bf16.mxu0 %v564_v40 }
 0x127   :  { %399 = vmatmul.mubr.bf16.gmra.mrb[4].mxu1 %v557_v41  ;;  %369 = vmatmul.mubr.bf16.gmra.mrb[36].mxu0 %v566_v42 }
 0x128   :  { %408 = vmatprep.mubr.bf16.mxu1 %v561_v43  ;;  %378 = vmatprep.mubr.bf16.mxu0 %v570_v44 }
 0x12f   :  { %409 = vmatmul.mubr.bf16.gmra.mrb[8].mxu1 %v563_v45  ;;  %379 = vmatmul.mubr.bf16.gmra.mrb[40].mxu0 %v572_v46 }
 0x130   :  { %418 = vmatprep.mubr.bf16.mxu1 %v567_v47 }
 0x137   :  { %419 = vmatmul.mubr.bf16.gmra.mrb[12].mxu1 %v569_v48 }
 0x138   :  { %428 = vmatprep.mubr.bf16.mxu1 %v573_v49 }
 0x13f   :  { %429 = vmatmul.mubr.bf16.gmra.mrb[16].mxu1 %v575_v50 }
 0x1f2   :  { %v390_v51 = vpop.f32.mrb[0].mxu1  ;;  %v360_v52 = vpop.f32.mrb[32].mxu0 }
 0x1f3   :  { %451 = vst [vmem:[#allocation2 + $0x60] sm:$0xff] %v390_v51  ;;  %v392_v53 = vpop.f32.mrb[1].mxu1  ;;  %439 = vst [vmem:[#allocation2] sm:$0xff] %v360_v52  ;;  %v362_v54 = vpop.f32.mrb[33].mxu0 }
 0x1f4   :  { %452 = vst [vmem:[#allocation2 + $0x68] sm:$0xff] %v392_v53  ;;  %v394_v55 = vpop.f32.mrb[2].mxu1  ;;  %440 = vst [vmem:[#allocation2 + $0x8] sm:$0xff] %v362_v54  ;;  %v364_v56 = vpop.f32.mrb[34].mxu0 }
 0x1f5   :  { %453 = vst [vmem:[#allocation2 + $0x70] sm:$0xff] %v394_v55  ;;  %v396_v57 = vpop.f32.mrb[3].mxu1  ;;  %441 = vst [vmem:[#allocation2 + $0x10] sm:$0xff] %v364_v56  ;;  %v366_v58 = vpop.f32.mrb[35].mxu0 }
 0x1f6   :  { %454 = vst [vmem:[#allocation2 + $0x78] sm:$0xff] %v396_v57  ;;  %442 = vst [vmem:[#allocation2 + $0x18] sm:$0xff] %v366_v58 }
 0x1fa   :  { %v400_v59 = vpop.f32.mrb[4].mxu1  ;;  %v370_v60 = vpop.f32.mrb[36].mxu0 }
 0x1fb   :  { %455 = vst [vmem:[#allocation2 + $0x80] sm:$0xff] %v400_v59  ;;  %v402_v61 = vpop.f32.mrb[5].mxu1  ;;  %443 = vst [vmem:[#allocation2 + $0x20] sm:$0xff] %v370_v60  ;;  %v372_v62 = vpop.f32.mrb[37].mxu0 }
 0x1fc   :  { %456 = vst [vmem:[#allocation2 + $0x88] sm:$0xff] %v402_v61  ;;  %v404_v63 = vpop.f32.mrb[6].mxu1  ;;  %444 = vst [vmem:[#allocation2 + $0x28] sm:$0xff] %v372_v62  ;;  %v374_v0 = vpop.f32.mrb[38].mxu0 }
 0x1fd   :  { %457 = vst [vmem:[#allocation2 + $0x90] sm:$0xff] %v404_v63  ;;  %v406_v1 = vpop.f32.mrb[7].mxu1  ;;  %445 = vst [vmem:[#allocation2 + $0x30] sm:$0xff] %v374_v0  ;;  %v376_v2 = vpop.f32.mrb[39].mxu0 }
 0x1fe   :  { %458 = vst [vmem:[#allocation2 + $0x98] sm:$0xff] %v406_v1  ;;  %446 = vst [vmem:[#allocation2 + $0x38] sm:$0xff] %v376_v2 }
 0x202   :  { %v410_v3 = vpop.f32.mrb[8].mxu1  ;;  %v380_v4 = vpop.f32.mrb[40].mxu0 }
 0x203   :  { %459 = vst [vmem:[#allocation2 + $0xa0] sm:$0xff] %v410_v3  ;;  %v412_v5 = vpop.f32.mrb[9].mxu1  ;;  %447 = vst [vmem:[#allocation2 + $0x40] sm:$0xff] %v380_v4  ;;  %v382_v6 = vpop.f32.mrb[41].mxu0 }
 0x204   :  { %460 = vst [vmem:[#allocation2 + $0xa8] sm:$0xff] %v412_v5  ;;  %v414_v7 = vpop.f32.mrb[10].mxu1  ;;  %448 = vst [vmem:[#allocation2 + $0x48] sm:$0xff] %v382_v6  ;;  %v384_v8 = vpop.f32.mrb[42].mxu0 }
 0x205   :  { %461 = vst [vmem:[#allocation2 + $0xb0] sm:$0xff] %v414_v7  ;;  %v416_v9 = vpop.f32.mrb[11].mxu1  ;;  %449 = vst [vmem:[#allocation2 + $0x50] sm:$0xff] %v384_v8  ;;  %v386_v10 = vpop.f32.mrb[43].mxu0 }
 0x206   :  { %462 = vst [vmem:[#allocation2 + $0xb8] sm:$0xff] %v416_v9  ;;  %450 = vst [vmem:[#allocation2 + $0x58] sm:$0xff] %v386_v10 }
 0x20a   :  { %v420_v11 = vpop.f32.mrb[12].mxu1 }
 0x20b   :  { %463 = vst [vmem:[#allocation2 + $0xc0] sm:$0xff] %v420_v11  ;;  %v422_v12 = vpop.f32.mrb[13].mxu1 }
 0x20c   :  { %464 = vst [vmem:[#allocation2 + $0xc8] sm:$0xff] %v422_v12  ;;  %v424_v13 = vpop.f32.mrb[14].mxu1 }
 0x20d   :  { %465 = vst [vmem:[#allocation2 + $0xd0] sm:$0xff] %v424_v13  ;;  %v426_v14 = vpop.f32.mrb[15].mxu1 }
 0x20e   :  { %466 = vst [vmem:[#allocation2 + $0xd8] sm:$0xff] %v426_v14 }
 0x212   :  { %v430_v15 = vpop.f32.mrb[16].mxu1 }
 0x213   :  { %467 = vst [vmem:[#allocation2 + $0xe0] sm:$0xff] %v430_v15  ;;  %v432_v16 = vpop.f32.mrb[17].mxu1 }
 0x214   :  { %468 = vst [vmem:[#allocation2 + $0xe8] sm:$0xff] %v432_v16  ;;  %v434_v17 = vpop.f32.mrb[18].mxu1 }
 0x215   :  { %469 = vst [vmem:[#allocation2 + $0xf0] sm:$0xff] %v434_v17  ;;  %v436_v18 = vpop.f32.mrb[19].mxu1 }
 0x216   :  { %470 = vst [vmem:[#allocation2 + $0xf8] sm:$0xff] %v436_v18 }
 0x217   :  { %587 = shalt.err (!%p584_p4)
}
 0x218   :  { %s588_s25 = scalar_lea.hbm %s749_s3, 4096 }
 0x219   :  { %p589_p5 = scmp.ne.s32.totalorder %s749_s3, %s588_s25  ;;  %p592_p6 = scmp.lt.u32.totalorder %s588_s25, %s749_s3 }
 0x21b   :  { %p594_p7 = pnand %p592_p6, %p589_p5 }
 0x21d   :  { %597 = shalt.err (!%p594_p7)
}
 0x21e   :  { %s602_s30 = smov 256   ;;  %s603_s4 = smov 16  }
 0x21f   :  { %482 = dma.vmem_to_hbm [thread:$0]  %s477_s22, 4096, %s749_s3, [#allocation3], %s602_s30, %s602_s30, %s603_s4  }
 0x220   :  { %598 = dma.done.wait [#allocation3], 4096  }
 0x221   :  { %599 = vsyncadd [#allocation3], 4294963200 }
 0x222   :  { %486 = vsyncpa [#allocation3], 1 }

</bundles_post_ra>
